<compile_context>
chip_gen: v7x
topology: tpu7x:2x2x1
jax: 0.10.0
libtpu: 0.0.40
codegen_flags: <defaults>
</compile_context>

<pallas_src>
import jax
import jax.numpy as jnp
import numpy as np
from jax.experimental import pallas as pl
from jax.experimental.pallas import tpu as pltpu

# ----- small config (consistent with BertConfig semantics, scaled down) -----
B = 2            # batch
S = 8            # sequence length
H = 32           # hidden_size
V = 128          # voc_size (lane-dense output: full 128-lane stores)


def cls_head_kernel(x_ref, w1_ref, b1_ref, w2_ref, b2_ref, o_ref):
    # x_ref/w*_ref are bf16 (native MXU path); biases and accumulators are f32.
    x = x_ref[...]                                        # (B*S, H) bf16

    # Linear(H, H) + bias + ReLU  (f32 accumulate, f32 elementwise)
    h = jnp.dot(x, w1_ref[...], preferred_element_type=jnp.float32)
    h = jnp.maximum(h + b1_ref[...], 0.0)

    # Linear(H, V)  (cast h to bf16 only for the MXU; accumulate f32)
    y = jnp.dot(h.astype(jnp.bfloat16), w2_ref[...],
                preferred_element_type=jnp.float32)
    o_ref[...] = (y + b2_ref[...]).astype(o_ref.dtype)


def cls_head(x, params):
    """x: (B, S, H) float32.  Returns (B, S, V) float32."""
    w1, b1, w2, b2 = params
    M = x.shape[0] * x.shape[1]
    x2d = x.reshape(M, x.shape[2]).astype(jnp.bfloat16)   # flatten batch*seq, bf16 feed
    w1b = w1.astype(jnp.bfloat16)
    w2b = w2.astype(jnp.bfloat16)

    flops = 2 * M * H * H + 2 * M * H * V
    bytes_accessed = (x2d.size + w1b.size + w2b.size) * 2 \
                     + (b1.size + b2.size) * 4 + M * V * 4

    out2d = pl.pallas_call(
        cls_head_kernel,
        out_shape=jax.ShapeDtypeStruct((M, V), jnp.float32),
        # single invocation, everything resident in VMEM (no grid, no per-step DMA)
        in_specs=[pl.BlockSpec(memory_space=pltpu.MemorySpace.VMEM)] * 5,
        out_specs=pl.BlockSpec(memory_space=pltpu.MemorySpace.VMEM),
        cost_estimate=pl.CostEstimate(flops=flops, transcendentals=0,
                                      bytes_accessed=bytes_accessed),
    )(x2d, w1b, b1, w2b, b2)

    return out2d.reshape(x.shape[0], x.shape[1], V)


# ---------------- pure-JAX reference (mirrors the PyTorch forward, f32) ------------
def reference(x, params):
    w1, b1, w2, b2 = params
    h = jnp.maximum(x @ w1 + b1, 0.0)
    return h @ w2 + b2


if __name__ == "__main__":
    key = jax.random.PRNGKey(0)
    ks = jax.random.split(key, 5)
    std = 0.02

    x = jax.random.normal(ks[0], (B, S, H), jnp.float32)

    params = (
        std * jax.random.normal(ks[1], (H, H), jnp.float32),   # W1  (in, out)
        std * jax.random.normal(ks[2], (1, H), jnp.float32),   # b1
        std * jax.random.normal(ks[3], (H, V), jnp.float32),   # W2  (in, out)
        std * jax.random.normal(ks[4], (1, V), jnp.float32),   # b2
    )

    out = jax.block_until_ready(cls_head(x, params))
    ref = jax.block_until_ready(reference(x, params))

    # bf16 MXU inputs vs. an f32 reference: allow bf16-level rounding error.
    np.testing.assert_allclose(np.asarray(out), np.asarray(ref), rtol=2e-2, atol=2e-3)
    print("KERNEL_OK")
</pallas_src>

<mosaic_0001>
module attributes {stable_mosaic.version = 11 : i64} {
  func.func @cls_head_kernel(%arg0: memref<16x32xbf16, #tpu.memory_space<vmem>>, %arg1: memref<32x32xbf16, #tpu.memory_space<vmem>>, %arg2: memref<1x32xf32, #tpu.memory_space<vmem>>, %arg3: memref<32x128xbf16, #tpu.memory_space<vmem>>, %arg4: memref<1x128xf32, #tpu.memory_space<vmem>>, %arg5: memref<16x128xf32, #tpu.memory_space<vmem>>) attributes {dimension_semantics = [], scalar_prefetch = 0 : i64, scratch_operands = 0 : i64, tpu.core_type = #tpu.core_type<tc>} {
    %c0 = arith.constant 0 : index
    %c0_0 = arith.constant 0 : index
    %0 = vector.load %arg0[%c0, %c0_0] : memref<16x32xbf16, #tpu.memory_space<vmem>>, vector<16x32xbf16>
    %c0_1 = arith.constant 0 : index
    %c0_2 = arith.constant 0 : index
    %1 = vector.load %arg1[%c0_1, %c0_2] : memref<32x32xbf16, #tpu.memory_space<vmem>>, vector<32x32xbf16>
    %cst = arith.constant dense<0.000000e+00> : vector<16x32xf32>
    %2 = tpu.matmul %0, %1, %cst {dimension_numbers = #tpu.dot_dimension_numbers<[1], [0], [0], [1], [0, 0, 1, 1], [], []>} : vector<16x32xbf16>, vector<32x32xbf16>, vector<16x32xf32> -> vector<16x32xf32>
    %c0_3 = arith.constant 0 : index
    %c0_4 = arith.constant 0 : index
    %3 = vector.load %arg2[%c0_3, %c0_4] : memref<1x32xf32, #tpu.memory_space<vmem>>, vector<1x32xf32>
    %4 = vector.broadcast %3 : vector<1x32xf32> to vector<16x32xf32>
    %5 = arith.addf %2, %4 : vector<16x32xf32>
    %cst_5 = arith.constant 0.000000e+00 : f32
    %6 = vector.broadcast %cst_5 : f32 to vector<16x32xf32>
    %7 = arith.maximumf %5, %6 : vector<16x32xf32>
    %8 = arith.truncf %7 : vector<16x32xf32> to vector<16x32xbf16>
    %c0_6 = arith.constant 0 : index
    %c0_7 = arith.constant 0 : index
    %9 = vector.load %arg3[%c0_6, %c0_7] : memref<32x128xbf16, #tpu.memory_space<vmem>>, vector<32x128xbf16>
    %cst_8 = arith.constant dense<0.000000e+00> : vector<16x128xf32>
    %10 = tpu.matmul %8, %9, %cst_8 {dimension_numbers = #tpu.dot_dimension_numbers<[1], [0], [0], [1], [0, 0, 1, 1], [], []>} : vector<16x32xbf16>, vector<32x128xbf16>, vector<16x128xf32> -> vector<16x128xf32>
    %c0_9 = arith.constant 0 : index
    %c0_10 = arith.constant 0 : index
    %11 = vector.load %arg4[%c0_9, %c0_10] : memref<1x128xf32, #tpu.memory_space<vmem>>, vector<1x128xf32>
    %12 = vector.broadcast %11 : vector<1x128xf32> to vector<16x128xf32>
    %13 = arith.addf %10, %12 : vector<16x128xf32>
    %c0_11 = arith.constant 0 : index
    %c0_12 = arith.constant 0 : index
    %14 = vector.load %arg5[%c0_11, %c0_12] : memref<16x128xf32, #tpu.memory_space<vmem>>, vector<16x128xf32>
    tpu.vector_store %arg5[%c0_11, %c0_12], %13 {strides = array<i32>} : memref<16x128xf32, #tpu.memory_space<vmem>>, vector<16x128xf32>,
    return
  }
}

</mosaic_0001>

<bundles_post_ra>
// kernel: tpu_custom_call.1
= control target key start
LH: loop header
LB: loop body
LE: loop exit
PB: predicated region body
PF: predicated region fallthrough
CT: control target
= control target key end

     0   :  { %10 = vsyncpa [#allocation3], 0  ;;  %s480_s0 = inlined_call_operand.hbm [shape: bf16[16,32], index: 0, kind: input, shape index: {}]   ;;  %s481_s1 = inlined_call_operand.hbm [shape: bf16[32,32], index: 1, kind: input, shape index: {}]   ;;  %s482_s2 = inlined_call_operand.vmem [shape: f32[1,32], index: 2, kind: input, shape index: {}]   ;;  %s483_s3 = inlined_call_operand.hbm [shape: bf16[32,128], index: 3, kind: input, shape index: {}]   ;;  %s484_s4 = inlined_call_operand.vmem [shape: f32[1,128], index: 4, kind: input, shape index: {}]   ;;  %s485_s5 = inlined_call_operand.hbm [shape: f32[16,128], index: 5, kind: output, shape index: {}]  }
   0x1   :  { %11 = vsyncpa [#allocation6], 0 }
   0x2   :  { %12 = vsyncpa [#allocation4], 0  ;;  %s368_s18 = smov [#allocation5]   ;;  %s369_s20 = smov [#allocation2]  }
   0x3   :  { %s30_s19 = sshll.u32 %s368_s18, 4  ;;  %s18_s21 = sshll.u32 %s369_s20, 4  ;;  %s31_s19 = int_to_ptr.vmem [resolvable:$true] %s30_s19  ;;  %s408_s21 = int_to_ptr.vmem [resolvable:$true] %s18_s21 }
   0x4   :  { %s274_s24 = scalar_lea.hbm %s481_s1, 256 }
   0x5   :  { %p275_p0 = scmp.ne.s32.totalorder %s481_s1, %s274_s24  ;;  %p278_p1 = scmp.lt.u32.totalorder %s274_s24, %s481_s1 }
   0x7   :  { %p280_p2 = pnand %p278_p1, %p275_p0 }
   0x9   :  { %283 = shalt.err (!%p280_p2)
}
   0xa   :  { %s284_s29 = scalar_lea.vmem %s31_s19, 256  ;;  %p289_p4 = scmp.lt.s32.totalorder %s31_s19, %s31_s19 }
   0xb   :  { %p285_p3 = scmp.ne.s32.totalorder %s31_s19, %s284_s29  ;;  %p290_p5 = scmp.lt.s32.totalorder %s284_s29, %s284_s29 }
   0xd   :  { %p291_p6 = por %p290_p5, %p289_p4 }
   0xf   :  { %p292_p7 = pnand %p291_p6, %p285_p3 }
  0x11   :  { %295 = shalt.err (!%p292_p7)
}
  0x12   :  { %s370_s30 = smov 64   ;;  %s371_s6 = smov 4  }
  0x13   :  { %36 = dma.hbm_to_vmem [thread:$0]  %s481_s1, 256, %s31_s19, [#allocation6], %s370_s30, %s370_s30, %s371_s6  }
  0x14   :  { %s296_s11 = scalar_lea.hbm %s480_s0, 128 }
  0x15   :  { %p297_p8 = scmp.ne.s32.totalorder %s480_s0, %s296_s11  ;;  %p300_p9 = scmp.lt.u32.totalorder %s296_s11, %s480_s0 }
  0x17   :  { %p302_p10 = pnand %p300_p9, %p297_p8 }
  0x19   :  { %305 = shalt.err (!%p302_p10)
}
  0x1a   :  { %s306_s16 = scalar_lea.vmem %s408_s21, 128  ;;  %p311_p12 = scmp.lt.s32.totalorder %s408_s21, %s408_s21 }
  0x1b   :  { %p307_p11 = scmp.ne.s32.totalorder %s408_s21, %s306_s16  ;;  %p312_p13 = scmp.lt.s32.totalorder %s306_s16, %s306_s16 }
  0x1d   :  { %p313_p0 = por %p312_p13, %p311_p12 }
  0x1f   :  { %p314_p1 = pnand %p313_p0, %p307_p11 }
  0x21   :  { %317 = shalt.err (!%p314_p1)
}
  0x22   :  { %24 = dma.hbm_to_vmem [thread:$0]  %s480_s0, 128, %s408_s21, [#allocation3], %s370_s30, %s370_s30, %s371_s6  }
  0x23   :  { %s372_s18 = smov [#allocation7]   ;;  %s318_s23 = scalar_lea.hbm %s483_s3, 256 }
  0x24   :  { %s44_s19 = sshll.u32 %s372_s18, 4  ;;  %p319_p2 = scmp.ne.s32.totalorder %s483_s3, %s318_s23  ;;  %s45_s19 = int_to_ptr.vmem [resolvable:$true] %s44_s19 }
  0x25   :  { %p322_p3 = scmp.lt.u32.totalorder %s318_s23, %s483_s3 }
  0x27   :  { %p324_p4 = pnand %p322_p3, %p319_p2 }
  0x29   :  { %327 = shalt.err (!%p324_p4)
}
  0x2a   :  { %s328_s28 = scalar_lea.vmem %s45_s19, 256  ;;  %p333_p6 = scmp.lt.s32.totalorder %s45_s19, %s45_s19 }
  0x2b   :  { %p329_p5 = scmp.ne.s32.totalorder %s45_s19, %s328_s28  ;;  %p334_p7 = scmp.lt.s32.totalorder %s328_s28, %s328_s28 }
  0x2d   :  { %p335_p8 = por %p334_p7, %p333_p6 }
  0x2f   :  { %p336_p9 = pnand %p335_p8, %p329_p5 }
  0x31   :  { %339 = shalt.err (!%p336_p9)
}
  0x32   :  { %50 = dma.hbm_to_vmem [thread:$0]  %s483_s3, 256, %s45_s19, [#allocation6], %s370_s30, %s370_s30, %s371_s6  }
  0x33   :  { %362 = dma.done.wait [#allocation3], 128  }
  0x34   :  { %363 = vsyncadd [#allocation3], 4294967168 }
  0x35   :  { %364 = dma.done.wait [#allocation6], 512  }
  0x36   :  { %365 = vsyncadd [#allocation6], 4294966784  ;;  %v373_v0 = vmov 0.0   ;;  %vm374_vm0 = vmmov 0   ;;  %v269_v1 = vld [vmem:[#allocation5] sm:$0xff]   ;;  %v270_v2 = vld [vmem:[#allocation5 + $0x8] sm:$0xff]  }
  0x37   :  { %243 = vmatprep.subr.bf16.mxu0 %v373_v0  ;;  %247 = vmatprep.mubr.msk.bf16.mxu0 %vm374_vm0, %v373_v0  ;;  %v271_v3 = vld [vmem:[#allocation2] sm:$0xff]   ;;  %vm93_vm1 = vcmask 261120   ;;  %v272_v4 = vld [vmem:[#allocation7] sm:$0xff]   ;;  %s375_s7 = smov [#allocation8]  }
  0x38   :  { %251 = vmatprep.subr.bf16.mxu1 %v373_v0  ;;  %255 = vmatprep.mubr.msk.bf16.mxu1 %vm374_vm0, %v373_v0  ;;  %v273_v5 = vld [vmem:[#allocation7 + $0x8] sm:$0xff]   ;;  %s215_s8 = sshll.u32 %s375_s7, 4  ;;  %s216_s8 = int_to_ptr.vmem [resolvable:$true] %s215_s8 }
  0x39   :  { %244 = vmatpush3.bf16.msra.mxu0 %v269_v1  ;;  %252 = vmatpush3.bf16.msra.mxu1 %v272_v4  ;;  %v228_v6 = vld [vmem:[%s482_s2] ss:$0 sm:$0xff]  ;;  %s340_s2 = scalar_lea.vmem %s216_s8, 256  ;;  %p345_p11 = scmp.lt.s32.totalorder %s216_s8, %s216_s8 }
  0x3a   :  { %245 = vmatprep.subr.bf16.mxu0 %v373_v0  ;;  %253 = vmatprep.subr.bf16.mxu1 %v373_v0  ;;  %v233_v16 = vld [vmem:[%s484_s4] ss:$0 sm:$0xff]  ;;  %p341_p10 = scmp.ne.s32.totalorder %s216_s8, %s340_s2  ;;  %p346_p12 = scmp.lt.s32.totalorder %s340_s2, %s340_s2 }
  0x3c   :  { %p347_p13 = por %p346_p12, %p345_p11 }
  0x3d   :  { %246 = vmatpush3.bf16.msra.mxu0 %v270_v2  ;;  %254 = vmatpush3.bf16.msra.mxu1 %v273_v5 }
  0x3e   :  { %p348_p0 = pnand %p347_p13, %p341_p10 }
  0x40   :  { %248 = vmatmul.mubr.msk.bf16.vlgmr.msra.gmra.mrb[0].mxu0 %vm93_vm1, %v271_v3 }
 0x113   :  { %v131_v7 = vpop.f32.mrb[0].mxu0 }
 0x114   :  { %v132_v8 = vadd.f32 %v228_v6, %v131_v7  ;;  %v249_v9 = vpop.f32.mrb[1].mxu0 }
 0x115   :  { %v134_v10 = vpop.f32.mrb[2].mxu0 }
 0x116   :  { %v135_v11 = vadd.f32 %v228_v6, %v134_v10  ;;  %v250_v12 = vpop.f32.mrb[3].mxu0  ;;  %v138_v13 = vmax.f32 %v132_v8, 0.0 }
 0x118   :  { %v139_v14 = vmax.f32 %v135_v11, 0.0 }
 0x11a   :  { %v140_v15 = vpack.c.bf16 %v139_v14, %v138_v13 }
 0x11c   :  { %256 = vmatmul.mubr.msk.bf16.vlgmr.msra.gmra.mrb[0].mxu1 %vm93_vm1, %v140_v15 }
 0x1ef   :  { %v201_v17 = vpop.f32.mrb[0].mxu1 }
 0x1f0   :  { %v202_v18 = vadd.f32 %v233_v16, %v201_v17  ;;  %v257_v19 = vpop.f32.mrb[1].mxu1 }
 0x1f1   :  { %v204_v20 = vpop.f32.mrb[2].mxu1 }
 0x1f2   :  { %208 = vst [vmem:[#allocation8] sm:$0xff] %v202_v18  ;;  %v205_v21 = vadd.f32 %v233_v16, %v204_v20  ;;  %v258_v22 = vpop.f32.mrb[3].mxu1 }
 0x1f4   :  { %209 = vst [vmem:[#allocation8 + $0x8] sm:$0xff] %v205_v21 }
 0x1f5   :  { %351 = shalt.err (!%p348_p0)
}
 0x1f6   :  { %s352_s10 = scalar_lea.hbm %s485_s5, 256 }
 0x1f7   :  { %p353_p1 = scmp.ne.s32.totalorder %s485_s5, %s352_s10  ;;  %p356_p2 = scmp.lt.u32.totalorder %s352_s10, %s485_s5 }
 0x1f9   :  { %p358_p3 = pnand %p356_p2, %p353_p1 }
 0x1fb   :  { %361 = shalt.err (!%p358_p3)
}
 0x1fc   :  { %s376_s15 = smov 128   ;;  %s377_s16 = smov 8  }
 0x1fd   :  { %221 = dma.vmem_to_hbm [thread:$0]  %s216_s8, 256, %s485_s5, [#allocation4], %s376_s15, %s376_s15, %s377_s16  }
 0x1fe   :  { %366 = dma.done.wait [#allocation4], 256  }
 0x1ff   :  { %367 = vsyncadd [#allocation4], 4294967040 }
 0x200   :  { %225 = vsyncpa [#allocation3], 1 }
 0x201   :  { %226 = vsyncpa [#allocation6], 1 }
 0x202   :  { %227 = vsyncpa [#allocation4], 1 }

</bundles_post_ra>
